<compile_context>
chip_gen: v6e
topology: v6e:2x2x1
jax: 0.10.0
libtpu: 0.0.40
codegen_flags: <defaults>
</compile_context>

<pallas_src>
import functools
import math

import jax
import jax.numpy as jnp
from jax import lax
from jax.experimental import pallas as pl
from jax.experimental.pallas import tpu as pltpu

LN_EPS = 1e-5        # nn.LayerNorm default eps
NEG_BIG = -1e30      # finite "−inf": avoids NaN via exp(-inf - (-inf))


def _layer_norm(x, gamma, beta):
    mean = jnp.mean(x, axis=-1, keepdims=True)
    var = jnp.mean((x - mean) ** 2, axis=-1, keepdims=True)
    inv = lax.rsqrt(var + LN_EPS)
    return (x - mean) * inv * gamma + beta


def decoder_kernel(x_ref, wqkv_ref, wo_ref, g1_ref, b1_ref,
                   w1_ref, w2_ref, g2_ref, b2_ref, o_ref,
                   *, n_blocks, nr_heads, head_dim):
    """All 7 decoder blocks for one batch element; whole (S, D) tile in VMEM."""
    x0 = x_ref[0].astype(jnp.float32)            # (S, D)
    S, D = x0.shape
    Hd = nr_heads * head_dim
    scale = 1.0 / math.sqrt(head_dim)

    # Causal mask: computed ONCE per kernel invocation, reused by all blocks.
    row = lax.broadcasted_iota(jnp.int32, (S, S), 0)
    col = lax.broadcasted_iota(jnp.int32, (S, S), 1)
    causal = (col <= row)[None]                  # (1, S, S) -> broadcast over heads

    def block_body(i, x):
        # --- fused QKV projection: one (S,D)@(D,3*Hd) matmul ---
        qkv = jnp.dot(x, wqkv_ref[i], preferred_element_type=jnp.float32)
        q = qkv[:, 0 * Hd:1 * Hd].reshape(S, nr_heads, head_dim)
        k = qkv[:, 1 * Hd:2 * Hd].reshape(S, nr_heads, head_dim)
        v = qkv[:, 2 * Hd:3 * Hd].reshape(S, nr_heads, head_dim)

        # --- batched (head as batch dim) causal attention ---
        s = jnp.einsum('qhd,khd->hqk', q, k,
                       preferred_element_type=jnp.float32) * scale   # (H,S,S)
        s = jnp.where(causal, s, NEG_BIG)
        s = s - jnp.max(s, axis=-1, keepdims=True)
        p = jnp.exp(s)
        p = p * pl.reciprocal(jnp.sum(p, axis=-1, keepdims=True), approx=True)
        ctx = jnp.einsum('hqk,khd->qhd', p, v,
                         preferred_element_type=jnp.float32)         # (S,H,hd)
        attn = jnp.dot(ctx.reshape(S, Hd), wo_ref[i],
                       preferred_element_type=jnp.float32)           # (S,D)

        # --- add & norm 1 ---
        h1 = _layer_norm(x + attn, g1_ref[i], b1_ref[i])

        # --- feed forward: relu(relu(h1 @ W1) @ W2); dropout = identity (eval) ---
        f = jnp.maximum(
            jnp.dot(h1, w1_ref[i], preferred_element_type=jnp.float32), 0.0)
        f = jnp.maximum(
            jnp.dot(f, w2_ref[i], preferred_element_type=jnp.float32), 0.0)

        # --- add & norm 2 ---
        return _layer_norm(h1 + f, g2_ref[i], b2_ref[i])

    xf = lax.fori_loop(0, n_blocks, block_body, x0)
    o_ref[0] = xf.astype(o_ref.dtype)


def decoder_forward(x, params_list, nr_heads, head_dim):
    B, S, D = x.shape
    n_blocks = len(params_list)
    Hd = nr_heads * head_dim
    M = 4 * D

    # Stack per-block weights along a leading block axis; fuse Q|K|V.
    wqkv = jnp.stack([jnp.concatenate([p["wq"], p["wk"], p["wv"]], axis=1)
                      for p in params_list])                 # (L, D, 3*Hd)
    wo = jnp.stack([p["wo"] for p in params_list])           # (L, Hd, D)
    w1 = jnp.stack([p["w1"] for p in params_list])           # (L, D, 4D)
    w2 = jnp.stack([p["w2"] for p in params_list])           # (L, 4D, D)
    g1 = jnp.stack([p["g1"] for p in params_list])           # (L, 1, D)
    b1 = jnp.stack([p["b1"] for p in params_list])
    g2 = jnp.stack([p["g2"] for p in params_list])
    b2 = jnp.stack([p["b2"] for p in params_list])

    def full(shape):
        n = len(shape)
        return pl.BlockSpec(shape, lambda b, _n=n: (0,) * _n)

    kernel = functools.partial(decoder_kernel, n_blocks=n_blocks,
                               nr_heads=nr_heads, head_dim=head_dim)
    return pl.pallas_call(
        kernel,
        out_shape=jax.ShapeDtypeStruct((B, S, D), x.dtype),
        grid=(B,),
        in_specs=[
            pl.BlockSpec((1, S, D), lambda b: (b, 0, 0)),    # one batch row / step
            full((n_blocks, D, 3 * Hd)),                     # wqkv  (VMEM resident)
            full((n_blocks, Hd, D)),                         # wo
            full((n_blocks, 1, D)), full((n_blocks, 1, D)),  # g1, b1
            full((n_blocks, D, M)), full((n_blocks, M, D)),  # w1, w2
            full((n_blocks, 1, D)), full((n_blocks, 1, D)),  # g2, b2
        ],
        out_specs=pl.BlockSpec((1, S, D), lambda b: (b, 0, 0)),
        compiler_params=pltpu.CompilerParams(
            dimension_semantics=("parallel",)),
    )(x, wqkv, wo, g1, b1, w1, w2, g2, b2)


def init_decoder_params(key, token_len, token_depth, nr_heads, n_blocks=7):
    D, Hd, M = token_len, nr_heads * token_depth, 4 * token_len
    params = []
    for _ in range(n_blocks):
        key, k0, k1, k2, k3, k4, k5 = jax.random.split(key, 7)
        params.append(dict(
            wq=jax.random.normal(k0, (D, Hd), jnp.float32) * 0.05,
            wk=jax.random.normal(k1, (D, Hd), jnp.float32) * 0.05,
            wv=jax.random.normal(k2, (D, Hd), jnp.float32) * 0.05,
            wo=jax.random.normal(k3, (Hd, D), jnp.float32) * 0.05,
            w1=jax.random.normal(k4, (D, M), jnp.float32) * 0.05,
            w2=jax.random.normal(k5, (M, D), jnp.float32) * 0.05,
            g1=jnp.ones((1, D), jnp.float32), b1=jnp.zeros((1, D), jnp.float32),
            g2=jnp.ones((1, D), jnp.float32), b2=jnp.zeros((1, D), jnp.float32),
        ))
    return params


def decoder_ref(x, params_list, nr_heads, head_dim):
    """Pure-JAX reference mirroring the PyTorch forward (eval mode)."""
    def ln(x, g, b):
        m = x.mean(-1, keepdims=True)
        v = ((x - m) ** 2).mean(-1, keepdims=True)
        return (x - m) / jnp.sqrt(v + LN_EPS) * g + b

    B, S, _ = x.shape
    mask = jnp.tril(jnp.ones((S, S), bool))
    for p in params_list:
        q = (x @ p["wq"]).reshape(B, S, nr_heads, head_dim).transpose(0, 2, 1, 3)
        k = (x @ p["wk"]).reshape(B, S, nr_heads, head_dim).transpose(0, 2, 1, 3)
        v = (x @ p["wv"]).reshape(B, S, nr_heads, head_dim).transpose(0, 2, 1, 3)
        s = (q @ k.transpose(0, 1, 3, 2)) / math.sqrt(head_dim)
        s = jnp.where(mask, s, -jnp.inf)
        a = jax.nn.softmax(s, axis=-1)
        o = (a @ v).transpose(0, 2, 1, 3).reshape(B, S, -1) @ p["wo"]
        x = ln(x + o, p["g1"][0], p["b1"][0])
        f = jnp.maximum(x @ p["w1"], 0.0)
        f = jnp.maximum(f @ p["w2"], 0.0)
        x = ln(x + f, p["g2"][0], p["b2"][0])
    return x


if __name__ == "__main__":
    B, S = 2, 8
    token_len, token_depth, nr_heads = 32, 8, 4   # head_dim = token_depth

    key = jax.random.PRNGKey(0)
    kx, kp = jax.random.split(key)
    x = jax.random.normal(kx, (B, S, token_len), jnp.float32)
    params = init_decoder_params(kp, token_len, token_depth, nr_heads, n_blocks=7)

    fwd = jax.jit(decoder_forward, static_argnums=(2, 3))
    out = fwd(x, params, nr_heads, token_depth)
    out = jax.block_until_ready(out)

    ref = decoder_ref(x, params, nr_heads, token_depth)
    assert out.shape == (B, S, token_len)
    # Tolerance accounts for the EUP approximate reciprocal in the softmax.
    assert jnp.allclose(out, ref, atol=2e-3, rtol=2e-3), \
        f"max abs err {float(jnp.max(jnp.abs(out - ref)))}"

    print("KERNEL_OK")
</pallas_src>

<mosaic_0001>
module attributes {stable_mosaic.version = 11 : i64} {
  func.func @decoder_kernel(%arg0: i32, %arg1: memref<1x8x32xf32, #tpu.memory_space<vmem>>, %arg2: memref<7x32x96xf32, #tpu.memory_space<vmem>>, %arg3: memref<7x32x32xf32, #tpu.memory_space<vmem>>, %arg4: memref<7x1x32xf32, #tpu.memory_space<vmem>>, %arg5: memref<7x1x32xf32, #tpu.memory_space<vmem>>, %arg6: memref<7x32x128xf32, #tpu.memory_space<vmem>>, %arg7: memref<7x128x32xf32, #tpu.memory_space<vmem>>, %arg8: memref<7x1x32xf32, #tpu.memory_space<vmem>>, %arg9: memref<7x1x32xf32, #tpu.memory_space<vmem>>, %arg10: memref<1x8x32xf32, #tpu.memory_space<vmem>>) attributes {dimension_semantics = [#tpu.dimension_semantics<parallel>], iteration_bounds = array<i64: 2>, scalar_prefetch = 0 : i64, scratch_operands = 0 : i64, tpu.core_type = #tpu.core_type<tc>, window_params = [{transform_indices = @transform_0, window_bounds = array<i64: 1, 8, 32>}, {pipeline_mode = #tpu.pipeline_mode<synchronous>, transform_indices = @transform_1, window_bounds = array<i64: 7, 32, 96>}, {pipeline_mode = #tpu.pipeline_mode<synchronous>, transform_indices = @transform_2, window_bounds = array<i64: 7, 32, 32>}, {pipeline_mode = #tpu.pipeline_mode<synchronous>, transform_indices = @transform_3, window_bounds = array<i64: 7, 1, 32>}, {pipeline_mode = #tpu.pipeline_mode<synchronous>, transform_indices = @transform_4, window_bounds = array<i64: 7, 1, 32>}, {pipeline_mode = #tpu.pipeline_mode<synchronous>, transform_indices = @transform_5, window_bounds = array<i64: 7, 32, 128>}, {pipeline_mode = #tpu.pipeline_mode<synchronous>, transform_indices = @transform_6, window_bounds = array<i64: 7, 128, 32>}, {pipeline_mode = #tpu.pipeline_mode<synchronous>, transform_indices = @transform_7, window_bounds = array<i64: 7, 1, 32>}, {pipeline_mode = #tpu.pipeline_mode<synchronous>, transform_indices = @transform_8, window_bounds = array<i64: 7, 1, 32>}, {transform_indices = @transform_9, window_bounds = array<i64: 1, 8, 32>}]} {
    %c0 = arith.constant 0 : index
    %c0_0 = arith.constant 0 : index
    %c0_1 = arith.constant 0 : index
    %0 = vector.load %arg1[%c0, %c0_0, %c0_1] : memref<1x8x32xf32, #tpu.memory_space<vmem>>, vector<1x8x32xf32>
    %1 = vector.shape_cast %0 : vector<1x8x32xf32> to vector<8x32xf32>
    %2 = tpu.iota {dimensions = array<i32: 0>} : vector<8x8xi32>
    %3 = tpu.iota {dimensions = array<i32: 1>} : vector<8x8xi32>
    %4 = arith.cmpi sle, %3, %2 : vector<8x8xi32>
    %5 = vector.shape_cast %4 : vector<8x8xi1> to vector<1x8x8xi1>
    %c0_i32 = arith.constant 0 : i32
    %c7_i32 = arith.constant 7 : i32
    %6 = arith.addi %c0_i32, %c7_i32 : i32
    %c1_i32 = arith.constant 1 : i32
    %7 = scf.for %arg11 = %c0_i32 to %6 step %c1_i32 iter_args(%arg12 = %1) -> (vector<8x32xf32>)  : i32 {
      %11 = arith.index_cast %arg11 : i32 to index
      %c0_6 = arith.constant 0 : index
      %c0_7 = arith.constant 0 : index
      %12 = vector.load %arg2[%11, %c0_6, %c0_7] : memref<7x32x96xf32, #tpu.memory_space<vmem>>, vector<1x32x96xf32>
      %13 = vector.shape_cast %12 : vector<1x32x96xf32> to vector<32x96xf32>
      %cst = arith.constant dense<0.000000e+00> : vector<8x96xf32>
      %14 = tpu.matmul %arg12, %13, %cst {dimension_numbers = #tpu.dot_dimension_numbers<[1], [0], [0], [1], [0, 0, 1, 1], [], []>} : vector<8x32xf32>, vector<32x96xf32>, vector<8x96xf32> -> vector<8x96xf32>
      %15 = vector.extract_strided_slice %14 {offsets = [0, 0], sizes = [8, 32], strides = [1, 1]} : vector<8x96xf32> to vector<8x32xf32>
      %16 = vector.shape_cast %15 : vector<8x32xf32> to vector<8x4x8xf32>
      %17 = vector.extract_strided_slice %14 {offsets = [0, 32], sizes = [8, 32], strides = [1, 1]} : vector<8x96xf32> to vector<8x32xf32>
      %18 = vector.shape_cast %17 : vector<8x32xf32> to vector<8x4x8xf32>
      %19 = vector.extract_strided_slice %14 {offsets = [0, 64], sizes = [8, 32], strides = [1, 1]} : vector<8x96xf32> to vector<8x32xf32>
      %20 = vector.shape_cast %19 : vector<8x32xf32> to vector<8x4x8xf32>
      "tpu.trace_start"() <{level = 10 : i32, message = "qhd,khd->hqk"}> : () -> ()
      %cst_8 = arith.constant dense<0.000000e+00> : vector<4x8x8xf32>
      %21 = tpu.matmul %16, %18, %cst_8 {dimension_numbers = #tpu.dot_dimension_numbers<[2], [2], [0], [0], [0, 1, 0, 0, 1, 0], [1], [1]>} : vector<8x4x8xf32>, vector<8x4x8xf32>, vector<4x8x8xf32> -> vector<4x8x8xf32>
      "tpu.trace_stop"() : () -> ()
      %cst_9 = arith.constant 0.353553385 : f32
      %22 = vector.broadcast %cst_9 : f32 to vector<4x8x8xf32>
      %23 = arith.mulf %21, %22 : vector<4x8x8xf32>
      %cst_10 = arith.constant -1.000000e+30 : f32
      %24 = vector.shape_cast %5 : vector<1x8x8xi1> to vector<1x8x8xi1>
      %25 = vector.broadcast %24 : vector<1x8x8xi1> to vector<4x8x8xi1>
      %26 = vector.broadcast %cst_10 : f32 to vector<4x8x8xf32>
      %27 = arith.select %25, %23, %26 : vector<4x8x8xi1>, vector<4x8x8xf32>
      %cst_11 = arith.constant dense<0xFF800000> : vector<4x8xf32>
      %28 = vector.multi_reduction <maximumf>, %27, %cst_11 [2] : vector<4x8x8xf32> to vector<4x8xf32>
      %29 = vector.shape_cast %28 : vector<4x8xf32> to vector<4x8x1xf32>
      %30 = vector.broadcast %29 : vector<4x8x1xf32> to vector<4x8x8xf32>
      %31 = arith.subf %27, %30 : vector<4x8x8xf32>
      %32 = math.exp %31 : vector<4x8x8xf32>
      %cst_12 = arith.constant dense<0.000000e+00> : vector<4x8xf32>
      %33 = vector.multi_reduction <add>, %32, %cst_12 [2] : vector<4x8x8xf32> to vector<4x8xf32>
      %34 = vector.shape_cast %33 : vector<4x8xf32> to vector<4x8x1xf32>
      %35 = tpu.reciprocal %34 {approx = true} : vector<4x8x1xf32> -> vector<4x8x1xf32>
      %36 = vector.broadcast %35 : vector<4x8x1xf32> to vector<4x8x8xf32>
      %37 = arith.mulf %32, %36 : vector<4x8x8xf32>
      "tpu.trace_start"() <{level = 10 : i32, message = "hqk,khd->qhd"}> : () -> ()
      %cst_13 = arith.constant dense<0.000000e+00> : vector<4x8x8xf32>
      %38 = tpu.matmul %20, %37, %cst_13 {dimension_numbers = #tpu.dot_dimension_numbers<[0], [2], [2], [1], [0, 1, 0, 2, 1, 1], [1], [0]>} : vector<8x4x8xf32>, vector<4x8x8xf32>, vector<4x8x8xf32> -> vector<4x8x8xf32>
      %39 = tpu.transpose %38, [2, 0, 1] : vector<4x8x8xf32> -> vector<8x4x8xf32>
      "tpu.trace_stop"() : () -> ()
      %40 = vector.shape_cast %39 : vector<8x4x8xf32> to vector<8x32xf32>
      %41 = arith.index_cast %arg11 : i32 to index
      %c0_14 = arith.constant 0 : index
      %c0_15 = arith.constant 0 : index
      %42 = vector.load %arg3[%41, %c0_14, %c0_15] : memref<7x32x32xf32, #tpu.memory_space<vmem>>, vector<1x32x32xf32>
      %43 = vector.shape_cast %42 : vector<1x32x32xf32> to vector<32x32xf32>
      %cst_16 = arith.constant dense<0.000000e+00> : vector<8x32xf32>
      %44 = tpu.matmul %40, %43, %cst_16 {dimension_numbers = #tpu.dot_dimension_numbers<[1], [0], [0], [1], [0, 0, 1, 1], [], []>} : vector<8x32xf32>, vector<32x32xf32>, vector<8x32xf32> -> vector<8x32xf32>
      %45 = arith.addf %arg12, %44 : vector<8x32xf32>
      %46 = arith.index_cast %arg11 : i32 to index
      %c0_17 = arith.constant 0 : index
      %c0_18 = arith.constant 0 : index
      %47 = vector.load %arg4[%46, %c0_17, %c0_18] : memref<7x1x32xf32, #tpu.memory_space<vmem>>, vector<1x1x32xf32>
      %48 = vector.shape_cast %47 : vector<1x1x32xf32> to vector<1x32xf32>
      %49 = arith.index_cast %arg11 : i32 to index
      %c0_19 = arith.constant 0 : index
      %c0_20 = arith.constant 0 : index
      %50 = vector.load %arg5[%49, %c0_19, %c0_20] : memref<7x1x32xf32, #tpu.memory_space<vmem>>, vector<1x1x32xf32>
      %51 = vector.shape_cast %50 : vector<1x1x32xf32> to vector<1x32xf32>
      %cst_21 = arith.constant dense<0.000000e+00> : vector<8xf32>
      %52 = vector.multi_reduction <add>, %45, %cst_21 [1] : vector<8x32xf32> to vector<8xf32>
      %53 = vector.shape_cast %52 : vector<8xf32> to vector<8x1xf32>
      %cst_22 = arith.constant 3.200000e+01 : f32
      %54 = vector.broadcast %cst_22 : f32 to vector<8x1xf32>
      %55 = arith.divf %53, %54 : vector<8x1xf32>
      %56 = vector.broadcast %55 : vector<8x1xf32> to vector<8x32xf32>
      %57 = arith.subf %45, %56 : vector<8x32xf32>
      %58 = arith.mulf %57, %57 : vector<8x32xf32>
      %cst_23 = arith.constant dense<0.000000e+00> : vector<8xf32>
      %59 = vector.multi_reduction <add>, %58, %cst_23 [1] : vector<8x32xf32> to vector<8xf32>
      %60 = vector.shape_cast %59 : vector<8xf32> to vector<8x1xf32>
      %cst_24 = arith.constant 3.200000e+01 : f32
      %61 = vector.broadcast %cst_24 : f32 to vector<8x1xf32>
      %62 = arith.divf %60, %61 : vector<8x1xf32>
      %cst_25 = arith.constant 9.99999974E-6 : f32
      %63 = vector.broadcast %cst_25 : f32 to vector<8x1xf32>
      %64 = arith.addf %62, %63 : vector<8x1xf32>
      %65 = math.rsqrt %64 : vector<8x1xf32>
      %66 = vector.broadcast %55 : vector<8x1xf32> to vector<8x32xf32>
      %67 = arith.subf %45, %66 : vector<8x32xf32>
      %68 = vector.broadcast %65 : vector<8x1xf32> to vector<8x32xf32>
      %69 = arith.mulf %67, %68 : vector<8x32xf32>
      %70 = vector.broadcast %48 : vector<1x32xf32> to vector<8x32xf32>
      %71 = arith.mulf %69, %70 : vector<8x32xf32>
      %72 = vector.broadcast %51 : vector<1x32xf32> to vector<8x32xf32>
      %73 = arith.addf %71, %72 : vector<8x32xf32>
      %74 = arith.index_cast %arg11 : i32 to index
      %c0_26 = arith.constant 0 : index
      %c0_27 = arith.constant 0 : index
      %75 = vector.load %arg6[%74, %c0_26, %c0_27] : memref<7x32x128xf32, #tpu.memory_space<vmem>>, vector<1x32x128xf32>
      %76 = vector.shape_cast %75 : vector<1x32x128xf32> to vector<32x128xf32>
      %cst_28 = arith.constant dense<0.000000e+00> : vector<8x128xf32>
      %77 = tpu.matmul %73, %76, %cst_28 {dimension_numbers = #tpu.dot_dimension_numbers<[1], [0], [0], [1], [0, 0, 1, 1], [], []>} : vector<8x32xf32>, vector<32x128xf32>, vector<8x128xf32> -> vector<8x128xf32>
      %cst_29 = arith.constant 0.000000e+00 : f32
      %78 = vector.broadcast %cst_29 : f32 to vector<8x128xf32>
      %79 = arith.maximumf %77, %78 : vector<8x128xf32>
      %80 = arith.index_cast %arg11 : i32 to index
      %c0_30 = arith.constant 0 : index
      %c0_31 = arith.constant 0 : index
      %81 = vector.load %arg7[%80, %c0_30, %c0_31] : memref<7x128x32xf32, #tpu.memory_space<vmem>>, vector<1x128x32xf32>
      %82 = vector.shape_cast %81 : vector<1x128x32xf32> to vector<128x32xf32>
      %cst_32 = arith.constant dense<0.000000e+00> : vector<8x32xf32>
      %83 = tpu.matmul %79, %82, %cst_32 {dimension_numbers = #tpu.dot_dimension_numbers<[1], [0], [0], [1], [0, 0, 1, 1], [], []>} : vector<8x128xf32>, vector<128x32xf32>, vector<8x32xf32> -> vector<8x32xf32>
      %cst_33 = arith.constant 0.000000e+00 : f32
      %84 = vector.broadcast %cst_33 : f32 to vector<8x32xf32>
      %85 = arith.maximumf %83, %84 : vector<8x32xf32>
      %86 = arith.addf %73, %85 : vector<8x32xf32>
      %87 = arith.index_cast %arg11 : i32 to index
      %c0_34 = arith.constant 0 : index
      %c0_35 = arith.constant 0 : index
      %88 = vector.load %arg8[%87, %c0_34, %c0_35] : memref<7x1x32xf32, #tpu.memory_space<vmem>>, vector<1x1x32xf32>
      %89 = vector.shape_cast %88 : vector<1x1x32xf32> to vector<1x32xf32>
      %90 = arith.index_cast %arg11 : i32 to index
      %c0_36 = arith.constant 0 : index
      %c0_37 = arith.constant 0 : index
      %91 = vector.load %arg9[%90, %c0_36, %c0_37] : memref<7x1x32xf32, #tpu.memory_space<vmem>>, vector<1x1x32xf32>
      %92 = vector.shape_cast %91 : vector<1x1x32xf32> to vector<1x32xf32>
      %cst_38 = arith.constant dense<0.000000e+00> : vector<8xf32>
      %93 = vector.multi_reduction <add>, %86, %cst_38 [1] : vector<8x32xf32> to vector<8xf32>
      %94 = vector.shape_cast %93 : vector<8xf32> to vector<8x1xf32>
      %cst_39 = arith.constant 3.200000e+01 : f32
      %95 = vector.broadcast %cst_39 : f32 to vector<8x1xf32>
      %96 = arith.divf %94, %95 : vector<8x1xf32>
      %97 = vector.broadcast %96 : vector<8x1xf32> to vector<8x32xf32>
      %98 = arith.subf %86, %97 : vector<8x32xf32>
      %99 = arith.mulf %98, %98 : vector<8x32xf32>
      %cst_40 = arith.constant dense<0.000000e+00> : vector<8xf32>
      %100 = vector.multi_reduction <add>, %99, %cst_40 [1] : vector<8x32xf32> to vector<8xf32>
      %101 = vector.shape_cast %100 : vector<8xf32> to vector<8x1xf32>
      %cst_41 = arith.constant 3.200000e+01 : f32
      %102 = vector.broadcast %cst_41 : f32 to vector<8x1xf32>
      %103 = arith.divf %101, %102 : vector<8x1xf32>
      %cst_42 = arith.constant 9.99999974E-6 : f32
      %104 = vector.broadcast %cst_42 : f32 to vector<8x1xf32>
      %105 = arith.addf %103, %104 : vector<8x1xf32>
      %106 = math.rsqrt %105 : vector<8x1xf32>
      %107 = vector.broadcast %96 : vector<8x1xf32> to vector<8x32xf32>
      %108 = arith.subf %86, %107 : vector<8x32xf32>
      %109 = vector.broadcast %106 : vector<8x1xf32> to vector<8x32xf32>
      %110 = arith.mulf %108, %109 : vector<8x32xf32>
      %111 = vector.broadcast %89 : vector<1x32xf32> to vector<8x32xf32>
      %112 = arith.mulf %110, %111 : vector<8x32xf32>
      %113 = vector.broadcast %92 : vector<1x32xf32> to vector<8x32xf32>
      %114 = arith.addf %112, %113 : vector<8x32xf32>
      scf.yield %114 : vector<8x32xf32>
    }
    %c7_i32_2 = arith.constant 7 : i32
    %c0_3 = arith.constant 0 : index
    %c0_4 = arith.constant 0 : index
    %c0_5 = arith.constant 0 : index
    %8 = vector.load %arg10[%c0_3, %c0_4, %c0_5] : memref<1x8x32xf32, #tpu.memory_space<vmem>>, vector<1x8x32xf32>
    %9 = vector.shape_cast %8 : vector<1x8x32xf32> to vector<8x32xf32>
    %10 = vector.shape_cast %7 : vector<8x32xf32> to vector<1x8x32xf32>
    tpu.vector_store %arg10[%c0_3, %c0_4, %c0_5], %10 {strides = array<i32>} : memref<1x8x32xf32, #tpu.memory_space<vmem>>, vector<1x8x32xf32>,
    return
  }
  func.func @transform_0(%arg0: i32) -> (i32, i32, i32) {
    %c0_i32 = arith.constant 0 : i32
    %c0_i32_0 = arith.constant 0 : i32
    %c0_i32_1 = arith.constant 0 : i32
    return %arg0, %c0_i32, %c0_i32_0 : i32, i32, i32
  }
  func.func @transform_1(%arg0: i32) -> (i32, i32, i32) {
    %c0_i32 = arith.constant 0 : i32
    %c0_i32_0 = arith.constant 0 : i32
    %c0_i32_1 = arith.constant 0 : i32
    %c0_i32_2 = arith.constant 0 : i32
    return %c0_i32, %c0_i32_0, %c0_i32_1 : i32, i32, i32
  }
  func.func @transform_2(%arg0: i32) -> (i32, i32, i32) {
    %c0_i32 = arith.constant 0 : i32
    %c0_i32_0 = arith.constant 0 : i32
    %c0_i32_1 = arith.constant 0 : i32
    %c0_i32_2 = arith.constant 0 : i32
    return %c0_i32, %c0_i32_0, %c0_i32_1 : i32, i32, i32
  }
  func.func @transform_3(%arg0: i32) -> (i32, i32, i32) {
    %c0_i32 = arith.constant 0 : i32
    %c0_i32_0 = arith.constant 0 : i32
    %c0_i32_1 = arith.constant 0 : i32
    %c0_i32_2 = arith.constant 0 : i32
    return %c0_i32, %c0_i32_0, %c0_i32_1 : i32, i32, i32
  }
  func.func @transform_4(%arg0: i32) -> (i32, i32, i32) {
    %c0_i32 = arith.constant 0 : i32
    %c0_i32_0 = arith.constant 0 : i32
    %c0_i32_1 = arith.constant 0 : i32
    %c0_i32_2 = arith.constant 0 : i32
    return %c0_i32, %c0_i32_0, %c0_i32_1 : i32, i32, i32
  }
  func.func @transform_5(%arg0: i32) -> (i32, i32, i32) {
    %c0_i32 = arith.constant 0 : i32
    %c0_i32_0 = arith.constant 0 : i32
    %c0_i32_1 = arith.constant 0 : i32
    %c0_i32_2 = arith.constant 0 : i32
    return %c0_i32, %c0_i32_0, %c0_i32_1 : i32, i32, i32
  }
  func.func @transform_6(%arg0: i32) -> (i32, i32, i32) {
    %c0_i32 = arith.constant 0 : i32
    %c0_i32_0 = arith.constant 0 : i32
    %c0_i32_1 = arith.constant 0 : i32
    %c0_i32_2 = arith.constant 0 : i32
    return %c0_i32, %c0_i32_0, %c0_i32_1 : i32, i32, i32
  }
  func.func @transform_7(%arg0: i32) -> (i32, i32, i32) {
    %c0_i32 = arith.constant 0 : i32
    %c0_i32_0 = arith.constant 0 : i32
    %c0_i32_1 = arith.constant 0 : i32
    %c0_i32_2 = arith.constant 0 : i32
    return %c0_i32, %c0_i32_0, %c0_i32_1 : i32, i32, i32
  }
  func.func @transform_8(%arg0: i32) -> (i32, i32, i32) {
    %c0_i32 = arith.constant 0 : i32
    %c0_i32_0 = arith.constant 0 : i32
    %c0_i32_1 = arith.constant 0 : i32
    %c0_i32_2 = arith.constant 0 : i32
    return %c0_i32, %c0_i32_0, %c0_i32_1 : i32, i32, i32
  }
  func.func @transform_9(%arg0: i32) -> (i32, i32, i32) {
    %c0_i32 = arith.constant 0 : i32
    %c0_i32_0 = arith.constant 0 : i32
    %c0_i32_1 = arith.constant 0 : i32
    return %arg0, %c0_i32, %c0_i32_0 : i32, i32, i32
  }
}

</mosaic_0001>

<bundles_post_ra>
// kernel: decoder_forward.1
= control target key start
LH: loop header
LB: loop body
LE: loop exit
PB: predicated region body
PF: predicated region fallthrough
CT: control target
= control target key end

     0   :  { %s2755_s0 = inlined_call_operand.vmem [shape: f32[2,8,32], index: 0, kind: input, shape index: {}]   ;;  %s2756_s1 = inlined_call_operand.vmem [shape: f32[7,32,96], index: 1, kind: input, shape index: {}]   ;;  %s2757_s2 = inlined_call_operand.vmem [shape: f32[7,32,32], index: 2, kind: input, shape index: {}]   ;;  %s2758_s3 = inlined_call_operand.vmem [shape: f32[7,1,32], index: 3, kind: input, shape index: {}]   ;;  %s2759_s4 = inlined_call_operand.vmem [shape: f32[7,1,32], index: 4, kind: input, shape index: {}]   ;;  %s2760_s5 = inlined_call_operand.vmem [shape: f32[7,32,128], index: 5, kind: input, shape index: {}]   ;;  %s2761_s6 = inlined_call_operand.vmem [shape: f32[7,128,32], index: 6, kind: input, shape index: {}]   ;;  %s2762_s7 = inlined_call_operand.vmem [shape: f32[7,1,32], index: 7, kind: input, shape index: {}]   ;;  %s2763_s8 = inlined_call_operand.vmem [shape: f32[7,1,32], index: 8, kind: input, shape index: {}]   ;;  %s2764_s9 = inlined_call_operand.hbm [shape: f32[2,8,32], index: 9, kind: output, shape index: {}]  }
   0x1   :  { %2765 = sst [smem:[#allocation5_spill]] %s2755_s0 }
   0x2   :  { %14 = vsyncpa [#allocation3], 0 }
   0x3   :  { %16 = vsyncpa [#allocation3 + $0x1], 0  ;;  %s2459_s30 = smov 0   ;;  %s2461_s10 = smov 0  }
   0x4   :  { %s2463_s11 = smov 0   ;;  %s2465_s12 = smov 0  }
   0x5 LB: > { %s2480_s13 = sadd.s32 4294967295, %s2386_s12   ;;  %s2042_s14 = sadd.s32 4294967294, %s2386_s12   ;;  %s2386_s12 = sphi %s2465_s12, %s2773_s12   ;;  %s2382_s11 = sphi %s2463_s11, %s2772_s11   ;;  %s2378_s10 = sphi %s2461_s10, %s2771_s10   ;;  %s2374_s30 = sphi %s2459_s30, %s2770_s30  }
   0x6   : > { %s2484_s15 = sadd.s32 1, %s2386_s12   ;;  %s223_s16 = sadd.s32 1, %s2382_s11 }
   0x7   : > { %s220_s17 = ssub.s32 %s2386_s12, %s2484_s15  ;;  %p233_p0 = scmp.ne.s32.totalorder %s2382_s11, %s2378_s10 }
   0x8   : > { %p221_p1 = scmp.eq.s32.totalorder %s220_s17, 0  ;;  %p234_p2 = scmp.eq.s32.totalorder %s2480_s13, 1 }
   0x9   : > { %p239_p3 = scmp.ne.s32.totalorder %s2378_s10, %s2374_s30  ;;  %p240_p4 = scmp.eq.s32.totalorder %s2042_s14, 1 }
   0xa   : > { %s2495_s18 = scalar_select %p221_p1, %s2382_s11, %s223_s16  }
   0xb   : > { %p2497_p5 = por %p234_p2, %p233_p0  ;;  %p2501_p6 = por %p240_p4, %p239_p3 }
   0xc   : > { %p2045_p7 = scmp.ge.s32.totalorder %s2386_s12, 1  ;;  %p289_p8 = scmp.lt.s32.totalorder %s2386_s12, 3 }
   0xe   : > { %p290_p9 = pnand %p2045_p7, %p289_p8 }
   0xf   : > { %s321_s21 = sand.u32 (!%p290_p9), 1, %s2378_s10   ;;  %p324_p10 = scmp.lt.s32.totalorder (!%p290_p9), %s2480_s13, 1 }
  0x10   : > { %293 = sbr.rel (%p290_p9) target bundleno = 2797 (0xaed), region = 56  ;;  %s2511_s22 = sshll.u32 (!%p290_p9), %s321_s21, 3 }
  0x11   : > { %s2768_s0 = sld [smem:[#allocation5_spill]] (!%p290_p9)  ;;  %s323_s28 = scalar_lea.vmem (!%p290_p9), [#allocation2], %s2511_s22 }
  0x12   : > { %s2526_s29 = smov (!%p290_p9), 0  }
  0x15   : > { %v329_v0 = vlaneseq  ;;  %s325_s23 = scalar_select %p324_p10, %s2480_s13, 1 }
  0x17   : > { %v2513_v1 = vshrl.u32 %v329_v0, 7  ;;  %v2515_v2 = vand.u32 127, %v329_v0  ;;  %s2047_s24 = sshll.u32 %s325_s23, 3 }
  0x18   : > { %s327_s27 = scalar_lea.vmem %s2768_s0, %s2047_s24 }
  0x19   : > { %vm333_vm0 = vcmp.le.s32.totalorder %v2515_v2, %v2513_v1  ;;  %v328_v3 = vld [vmem:[%s327_s27] sm:$0xff]  }
  0x1a LB: >> { %v2396_v4 = vmov 0.0   ;;  %vm2397_vm1 = vmmov 0   ;;  %s2538_s14 = sshll.u32 %s2394_s29, 5  ;;  %vm347_vm2 = vcmask 261120   ;;  %s2398_s24 = smov 104   ;;  %vm568_vm3 = vcmask 64512   ;;  %s2394_s29 = sphi %s2526_s29, %s339_s29   ;;  %v2390_v3 = vphi %v328_v3, %v2769_v3  }
  0x1b   : >> { %2123 = vmatprep.subr.mxu0 %v2396_v4  ;;  %2131 = vmatprep.mubr.msk.f32.mxu0 %vm2397_vm1, %v2396_v4  ;;  %s342_s23 = scalar_lea.vmem %s2756_s1, %s2538_s14  ;;  %s2399_s25 = smov 120   ;;  %vm1632_vm4 = vcmask 130048   ;;  %vm1634_vm5 = vcmask 195584  }
  0x1c   : >> { %2144 = vmatprep.subr.mxu1 %v2396_v4  ;;  %2146 = vmatprep.mubr.msk.f32.mxu1 %vm2397_vm1, %v2396_v4  ;;  %v346_v5 = vld [vmem:[%s342_s23 + $0x18] sm:$0xff]  ;;  %v345_v6 = vld [vmem:[%s342_s23 + $0x10] sm:$0xff]  ;;  %v344_v7 = vld [vmem:[%s342_s23 + $0x8] sm:$0xff]  ;;  %s2400_s26 = smov 96   ;;  %s2401_s27 = smov 112  }
  0x1d   : >> { %2124 = vmatpush3.msra.mxu0 %v346_v5  ;;  %v343_v8 = vld [vmem:[%s342_s23] sm:$0xff]  ;;  %s2402_s16 = smov 64   ;;  %s1747_s23 = scalar_lea.vmem %s2760_s5, %s2538_s14 }
  0x1e   : >> { %2125 = vmatprep.subr.mxu0 %v2396_v4  ;;  %s1715_s17 = scalar_lea.vmem %s2758_s3, %s2394_s29 }
  0x1f   : >> { %2126 = vmatpush3.msra.mxu0 %v345_v6 }
  0x20   : >> { %2127 = vmatprep.subr.mxu0 %v2396_v4 }
  0x21   : >> { %2128 = vmatpush3.msra.mxu0 %v344_v7 }
  0x22   : >> { %2129 = vmatprep.subr.mxu0 %v2396_v4 }
  0x23   : >> { %2130 = vmatpush3.msra.mxu0 %v343_v8 }
  0x24   : >> { %2132 = vmatmul.mubr.msk.f32.vlgmr.msra.gmra.mxu0 %vm347_vm2, %v2390_v3  ;;  %2134 = vmatprep.subr.mxu0 %v2396_v4 }
  0x25   : >> { %2136 = vmatprep.mubr.msk.f32.mxu0 %vm2397_vm1, %v2396_v4 }
  0xe4   : >> { %v2555_v9 = vpop.f32.mrf.mxu0 }
  0xe5   : >> { %426 = vrot.lane.b32.xlu1 %v2555_v9, %s2398_s24  ;;  %422 = vrot.lane.b32.xlu0 %v2555_v9, %s2399_s25  ;;  %s2623_s24 = scalar_lea.vmem %s2757_s2, %s2538_s14  ;;  %s2405_s25 = smov 16  }
  0xe6   : >> { %v2133_v10 = vpop.f32.mrf.mxu0  ;;  %s1916_s14 = scalar_lea.vmem %s2762_s7, %s2394_s29 }
  0xe9   : >> { %428 = vrot.lane.b32.xlu1 %v2555_v9, %s2400_s26  ;;  %424 = vrot.lane.b32.xlu0 %v2555_v9, %s2401_s27  ;;  %s2407_s27 = smov 24  }
 0x157   : >> { %v423_v11 = vpop.permute.xlu0 %422  ;;  %v427_v12 = vpop.permute.xlu1 %426 }
 0x158   : >> { %430 = vrot.lane.b32.xlu0 %v423_v11, %s2400_s26 }
 0x15b   : >> { %v425_v13 = vpop.permute.xlu0 %424  ;;  %v429_v14 = vpop.permute.xlu1 %428 }
 0x15c   : >> { %434 = vrot.lane.b32.xlu0 %v427_v12, %s2400_s26  ;;  %432 = vrot.lane.b32.xlu1 %v425_v13, %s2400_s26  ;;  %s2406_s26 = smov 8  }
 0x185   : >> { %440 = vxpose.xlu1.b32.start.end [1/1] (short) (narrow) %v429_v14, 8 }
 0x1ca   : >> { %v431_v15 = vpop.permute.xlu0 %430 }
 0x1cb   : >> { %472 = vxpose.xlu0.b32.start.end [1/1] (short) (narrow) %v431_v15, 8 }
 0x1ce   : >> { %v433_v16 = vpop.permute.xlu1 %432  ;;  %v435_v17 = vpop.permute.xlu0 %434 }
 0x1cf   : >> { %504 = vxpose.xlu0.b32.start.end [1/1] (short) (narrow) %v433_v16, 8 }
 0x1d3   : >> { %536 = vxpose.xlu0.b32.start.end [1/1] (short) (narrow) %v435_v17, 8 }
 0x201   : >> { %v456_v18 = vpop.trf.xlu1 }
 0x202   : >> { %2135 = vmatpush3.msra.mxu0 %v456_v18 }
 0x203   : >> { %2137 = vmatmul.mubr.msk.f32.vlgmr.msra.gmra.mxu0 %vm568_vm3, %v2555_v9  ;;  %2139 = vmatprep.subr.mxu0 %v2396_v4 }
 0x204   : >> { %2141 = vmatprep.mubr.msk.f32.mxu0 %vm2397_vm1, %v2396_v4 }
 0x247   : >> { %v488_v19 = vpop.trf.xlu0 }
 0x248   : >> { %2140 = vmatpush3.msra.mxu0 %v488_v19 }
 0x249   : >> { %2142 = vmatmul.mubr.msk.f32.vlgmr.msra.gmra.mxu0 %vm568_vm3, %v423_v11  ;;  %2149 = vmatprep.subr.mxu0 %v2396_v4 }
 0x24a   : >> { %2151 = vmatprep.mubr.msk.f32.mxu0 %vm2397_vm1, %v2396_v4 }
 0x24b   : >> { %v520_v20 = vpop.trf.xlu0 }
 0x24c   : >> { %2145 = vmatpush3.msra.mxu1 %v520_v20 }
 0x24d   : >> { %2147 = vmatmul.mubr.msk.f32.vlgmr.msra.gmra.mxu1 %vm568_vm3, %v425_v13  ;;  %2154 = vmatprep.subr.mxu1 %v2396_v4 }
 0x24e   : >> { %2156 = vmatprep.mubr.msk.f32.mxu1 %vm2397_vm1, %v2396_v4 }
 0x24f   : >> { %v552_v21 = vpop.trf.xlu0 }
 0x250   : >> { %2150 = vmatpush3.msra.mxu0 %v552_v21 }
 0x251   : >> { %2152 = vmatmul.mubr.msk.f32.vlgmr.msra.gmra.mxu0 %vm568_vm3, %v427_v12  ;;  %2159 = vmatprep.subr.mxu0 %v2396_v4 }
 0x252   : >> { %2161 = vmatprep.mubr.msk.f32.mxu0 %vm2397_vm1, %v2396_v4 }
 0x2c3   : >> { %v637_v22 = vpop.f32.mrf.mxu0 }
 0x2c4   : >> { %v857_v23 = vmul.f32 0.35355338, %v637_v22 }
 0x2c5   : >> { %v2138_v24 = vpop.f32.mrf.mxu0 }
 0x2c6   : >> { %v863_v25 = vsel %vm333_vm0, %v857_v23, -1e+30 }
 0x2c7   : >> { %v867_v26 = vsel %vm568_vm3, %v863_v25, -inf }
 0x2c8   : >> { %868 = vmax.xlane.f32.xlu1 %v867_v26 }
 0x309   : >> { %v709_v27 = vpop.f32.mrf.mxu0 }
 0x30a   : >> { %v858_v28 = vmul.f32 0.35355338, %v709_v27 }
 0x30b   : >> { %v2143_v29 = vpop.f32.mrf.mxu0 }
 0x30c   : >> { %v864_v30 = vsel %vm333_vm0, %v858_v28, -1e+30 }
 0x30d   : >> { %v781_v31 = vpop.f32.mrf.mxu1  ;;  %v870_v32 = vsel %vm568_vm3, %v864_v30, -inf }
 0x30e   : >> { %v859_v33 = vmul.f32 0.35355338, %v781_v31  ;;  %871 = vmax.xlane.f32.xlu0 %v870_v32  ;;  %v2403_v31 = vmov 1983009808  }
 0x30f   : >> { %v2148_v34 = vpop.f32.mrf.mxu1  ;;  %v1486_v32 = vunpack.c.l.s4 %v2403_v31 }
 0x310   : >> { %v865_v35 = vsel %vm333_vm0, %v859_v33, -1e+30 }
 0x311   : >> { %v853_v36 = vpop.f32.mrf.mxu0  ;;  %v873_v37 = vsel %vm568_vm3, %v865_v35, -inf }
 0x312   : >> { %v860_v38 = vmul.f32 0.35355338, %v853_v36  ;;  %874 = vmax.xlane.f32.xlu1 %v873_v37  ;;  %v1487_v37 = vunpack.c.0.s8 %v1486_v32 }
 0x313   : >> { %v2153_v39 = vpop.f32.mrf.mxu0 }
 0x314   : >> { %v866_v40 = vsel %vm333_vm0, %v860_v38, -1e+30 }
 0x315   : >> { %v876_v41 = vsel %vm568_vm3, %v866_v40, -inf }
 0x316   : >> { %877 = vmax.xlane.f32.xlu1 %v876_v41 }
 0x324   : >> { %911 = vrot.lane.b32.xlu0 %v2555_v9, %s2402_s16 }
 0x327   : >> { %913 = vrot.lane.b32.xlu1 %v423_v11, %s2402_s16 }
 0x328   : >> { %915 = vrot.lane.b32.xlu0 %v425_v13, %s2402_s16 }
 0x32b   : >> { %917 = vrot.lane.b32.xlu1 %v427_v12, %s2402_s16 }
 0x351   : >> { %v869_v42 = vpop.xlane.xlu1 %868 }
 0x352   : >> { %v879_v43 = vsub.f32 %v863_v25, %v869_v42 }
 0x354   : >> { %v883_v44 = vmul.f32 1.442695, %v879_v43 }
 0x356   : >> { %2298 = vpow2.f32 %v883_v44 }
 0x363   : >> { %v2299_v45 = vpop.eup %2298 }
 0x364   : >> { %v891_v46 = vsel %vm568_vm3, %v2299_v45, 0.0 }
 0x365   : >> { %892 = vadd.xlane.f32.xlu1 %v891_v46 }
 0x397   : >> { %v872_v47 = vpop.xlane.xlu0 %871 }
 0x398   : >> { %v880_v48 = vsub.f32 %v864_v30, %v872_v47  ;;  %v1640_v30 = vld [vmem:[%s2623_s24 + $0x18] sm:$0xff] }
 0x39a   : >> { %v885_v49 = vmul.f32 1.442695, %v880_v48 }
 0x39b   : >> { %v875_v50 = vpop.xlane.xlu1 %874  ;;  %v912_v62 = vpop.permute.xlu0 %911 }
 0x39c   : >> { %2300 = vpow2.f32 %v885_v49  ;;  %v881_v51 = vsub.f32 %v865_v35, %v875_v50  ;;  %v2404_v35 = vmov 1934713408  }
 0x39d   : >> { %v1518_v36 = vunpack.c.l.s4 %v2404_v35 }
 0x39e   : >> { %v887_v52 = vmul.f32 1.442695, %v881_v51 }
 0x39f   : >> { %v878_v53 = vpop.xlane.xlu1 %877  ;;  %v916_v0 = vpop.permute.xlu0 %915  ;;  %v1519_v39 = vunpack.c.0.s8 %v1518_v36 }
 0x3a0   : >> { %2302 = vpow2.f32 %v887_v52  ;;  %v882_v54 = vsub.f32 %v866_v40, %v878_v53  ;;  %v1490_v40 = vsub.s32 %v1487_v37, %v2513_v1  ;;  %v1751_v37 = vld [vmem:[%s1747_s23 + $0x18] sm:$0xff] }
 0x3a1   : >> { %v1522_v46 = vsub.s32 %v1519_v39, %v2513_v1  ;;  %v1748_v39 = vld [vmem:[%s1747_s23] sm:$0xff] }
 0x3a2   : >> { %v889_v55 = vmul.f32 1.442695, %v882_v54 }
 0x3a3   : >> { %v914_v63 = vpop.permute.xlu1 %913 }
 0x3a4   : >> { %2304 = vpow2.f32 %v889_v55  ;;  %v1639_v55 = vld [vmem:[%s2623_s24 + $0x10] sm:$0xff] }
 0x3a7   : >> { %v918_v5 = vpop.permute.xlu1 %917 }
 0x3a9   : >> { %v2301_v56 = vpop.eup %2300 }
 0x3aa   : >> { %v894_v57 = vsel %vm568_vm3, %v2301_v56, 0.0 }
 0x3ab   : >> { %895 = vadd.xlane.f32.xlu0 %v894_v57 }
 0x3ad   : >> { %v2303_v58 = vpop.eup %2302 }
 0x3ae   : >> { %v897_v59 = vsel %vm568_vm3, %v2303_v58, 0.0 }
 0x3af   : >> { %898 = vadd.xlane.f32.xlu1 %v897_v59 }
 0x3b1   : >> { %v2305_v60 = vpop.eup %2304 }
 0x3b2   : >> { %v900_v61 = vsel %vm568_vm3, %v2305_v60, 0.0 }
 0x3b3   : >> { %901 = vadd.xlane.f32.xlu0 %v900_v61 }
 0x3e0   : >> { %923 = vxpose.xlu0.b32.start.end [1/1] (short) (narrow) %v912_v62, 8 }
 0x3e2   : >> { %955 = vxpose.xlu1.b32.start.end [1/1] (short) (narrow) %v914_v63, 8 }
 0x3e4   : >> { %987 = vxpose.xlu0.b32.start.end [1/1] (short) (narrow) %v916_v0, 8 }
 0x3e8   : >> { %1019 = vxpose.xlu0.b32.start.end [1/1] (short) (narrow) %v918_v5, 8  ;;  %v1637_v5 = vld [vmem:[%s2623_s24] sm:$0xff] }
 0x3ee   : >> { %v893_v6 = vpop.xlane.xlu1 %892 }
 0x3ef   : >> { %2306 = vrcp.f32 %v893_v6 }
 0x3fc   : >> { %v2307_v7 = vpop.eup %2306 }
 0x3fd   : >> { %v907_v8 = vmul.f32 %v2307_v7, %v2299_v45 }
 0x3ff   : >> { %2155 = vmatpush3.xpose.msk.msra.mxu1 %vm568_vm3, %v907_v8 }
 0x400   : >> { %2164 = vmatprep.subr.mxu1 %v2396_v4 }
 0x434   : >> { %v896_v9 = vpop.xlane.xlu0 %895 }
 0x435   : >> { %2308 = vrcp.f32 %v896_v9 }
 0x438   : >> { %v899_v12 = vpop.xlane.xlu1 %898 }
 0x439   : >> { %2310 = vrcp.f32 %v899_v12 }
 0x43c   : >> { %v902_v13 = vpop.xlane.xlu0 %901 }
 0x43d   : >> { %2312 = vrcp.f32 %v902_v13 }
 0x442   : >> { %v2309_v10 = vpop.eup %2308 }
 0x443   : >> { %v908_v11 = vmul.f32 %v2309_v10, %v2301_v56  ;;  %v1638_v56 = vld [vmem:[%s2623_s24 + $0x8] sm:$0xff]  ;;  %s2068_s24 = sshll.u32 %s2394_s29, 7 }
 0x445   : >> { %2160 = vmatpush3.xpose.msk.msra.mxu0 %vm568_vm3, %v908_v11 }
 0x446   : >> { %2169 = vmatprep.subr.mxu0 %v2396_v4  ;;  %v2311_v14 = vpop.eup %2310 }
 0x447   : >> { %v909_v17 = vmul.f32 %v2311_v14, %v2303_v58 }
 0x44a   : >> { %v2313_v15 = vpop.eup %2312 }
 0x44b   : >> { %v910_v19 = vmul.f32 %v2313_v15, %v2305_v60 }
 0x45c   : >> { %v939_v16 = vpop.trf.xlu0 }
 0x45d   : >> { %2157 = vmatmul.mubr.msk.f32.vlgmr.msra.gmra.mxu1 %vm568_vm3, %v939_v16 }
 0x45e   : >> { %2165 = vmatpush3.xpose.msk.msra.mxu1 %vm568_vm3, %v909_v17  ;;  %v971_v18 = vpop.trf.xlu1  ;;  %2166 = vmatprep.mubr.msk.f32.mxu1 %vm2397_vm1, %v2396_v4 }
 0x45f   : >> { %2162 = vmatmul.mubr.msk.f32.vlgmr.msra.gmra.mxu0 %vm568_vm3, %v971_v18  ;;  %2196 = vmatprep.subr.mxu1 %v2396_v4 }
 0x460   : >> { %2170 = vmatpush3.xpose.msk.msra.mxu0 %vm568_vm3, %v910_v19  ;;  %v1003_v20 = vpop.trf.xlu0  ;;  %2171 = vmatprep.mubr.msk.f32.mxu0 %vm2397_vm1, %v2396_v4 }
 0x461   : >> { %2167 = vmatmul.mubr.msk.f32.vlgmr.msra.gmra.mxu1 %vm568_vm3, %v1003_v20  ;;  %2174 = vmatprep.subr.mxu0 %v2396_v4 }
 0x462   : >> { %2228 = vmatprep.mubr.msk.f32.mxu1 %vm2397_vm1, %v2396_v4 }
 0x464   : >> { %v1035_v21 = vpop.trf.xlu0 }
 0x465   : >> { %2172 = vmatmul.mubr.msk.f32.vlgmr.msra.gmra.mxu0 %vm568_vm3, %v1035_v21 }
 0x466   : >> { %2182 = vmatprep.mubr.msk.f32.mxu0 %vm2397_vm1, %v2396_v4  ;;  %2175 = vmatpush3.msra.mxu0 %v1640_v30 }
 0x467   : >> { %2176 = vmatprep.subr.mxu0 %v2396_v4 }
 0x468   : >> { %2177 = vmatpush3.msra.mxu0 %v1639_v55 }
 0x469   : >> { %2178 = vmatprep.subr.mxu0 %v2396_v4 }
 0x46a   : >> { %2179 = vmatpush3.msra.mxu0 %v1638_v56 }
 0x46b   : >> { %2180 = vmatprep.subr.mxu0 %v2396_v4 }
 0x46c   : >> { %2181 = vmatpush3.msra.mxu0 %v1637_v5 }
 0x46d   : >> { %2185 = vmatprep.subr.mxu0 %v2396_v4 }
 0x51d   : >> { %v1123_v22 = vpop.f32.mrf.mxu1 }
 0x51e   : >> { %1355 = vxpose.xlu1.b32.start.end [1/1] (short) (narrow) %v1123_v22, 8 }
 0x51f   : >> { %v2158_v23 = vpop.f32.mrf.mxu1  ;;  %v1199_v24 = vpop.f32.mrf.mxu0 }
 0x520   : >> { %1387 = vxpose.xlu0.b32.start.end [1/1] (short) (narrow) %v1199_v24, 8 }
 0x521   : >> { %v1275_v25 = vpop.f32.mrf.mxu1  ;;  %v2163_v26 = vpop.f32.mrf.mxu0 }
 0x522   : >> { %1419 = vxpose.xlu1.b32.start.end [1/1] (short) (narrow) %v1275_v25, 8 }
 0x523   : >> { %v2168_v27 = vpop.f32.mrf.mxu1 }
 0x525   : >> { %v1351_v28 = vpop.f32.mrf.mxu0 }
 0x526   : >> { %1451 = vxpose.xlu0.b32.start.end [1/1] (short) (narrow) %v1351_v28, 8 }
 0x527   : >> { %v2173_v29 = vpop.f32.mrf.mxu0 }
 0x59a   : >> { %v1371_v33 = vpop.trf.xlu1 }
 0x59c   : >> { %v1403_v34 = vpop.trf.xlu0 }
 0x59e   : >> { %v1435_v38 = vpop.trf.xlu1 }
 0x59f   : >> { %v1483_v41 = vcombine.low %v1371_v33, %v1435_v38  ;;  %v1484_v42 = vcombine.high %v1371_v33, %v1435_v38  ;;  %v1749_v38 = vld [vmem:[%s1747_s23 + $0x8] sm:$0xff] }
 0x5a1   : >> { %v1491_v47 = vrot.slane %v1483_v41, %v1490_v40  ;;  %v1498_v48 = vrot.slane %v1484_v42, %v1490_v40 }
 0x5a2   : >> { %v1467_v43 = vpop.trf.xlu0 }
 0x5a3   : >> { %v1499_v44 = vcombine.low %v1403_v34, %v1467_v43  ;;  %v1500_v45 = vcombine.high %v1403_v34, %v1467_v43 }
 0x5a5   : >> { %v1507_v49 = vrot.slane %v1499_v44, %v1490_v40  ;;  %v1514_v50 = vrot.slane %v1500_v45, %v1490_v40 }
 0x5a7   : >> { %v1515_v51 = vcombine.low %v1491_v47, %v1507_v49  ;;  %v1516_v52 = vcombine.high %v1491_v47, %v1507_v49  ;;  %v1531_v53 = vcombine.low %v1498_v48, %v1514_v50  ;;  %v1532_v54 = vcombine.high %v1498_v48, %v1514_v50 }
 0x5a9   : >> { %v1523_v57 = vrot.slane %v1515_v51, %v1522_v46  ;;  %v1530_v58 = vrot.slane %v1516_v52, %v1522_v46  ;;  %v1539_v59 = vrot.slane %v1531_v53, %v1522_v46  ;;  %v1546_v60 = vrot.slane %v1532_v54, %v1522_v46 }
 0x5ab   : >> { %v1551_v61 = vcombine.low %v1523_v57, %v1530_v58  ;;  %v2062_v62 = vcombine.high %v1523_v57, %v1530_v58  ;;  %v1567_v63 = vcombine.low %v1539_v59, %v1546_v60  ;;  %v2063_v0 = vcombine.high %v1539_v59, %v1546_v60  ;;  %v2065_v58 = vld [vmem:[%s1715_s17] ss:$0 sm:$0xff] }
 0x5ad   : >> { %v1558_v6 = vrot.slane %v1551_v61, %v1490_v40  ;;  %v1566_v7 = vrot.slane %v2062_v62, %v1490_v40  ;;  %v1574_v8 = vrot.slane %v1567_v63, %v1490_v40  ;;  %v1582_v9 = vrot.slane %v2063_v0, %v1490_v40 }
 0x5af   : >> { %v1584_v10 = vcombine.high %v1558_v6, %v1566_v7  ;;  %v1600_v11 = vcombine.high %v1574_v8, %v1582_v9  ;;  %v1583_v12 = vcombine.low %v1558_v6, %v1566_v7  ;;  %v1599_v13 = vcombine.low %v1574_v8, %v1582_v9 }
 0x5b1   : >> { %v1598_v14 = vrot.slane %v1584_v10, %v1522_v46  ;;  %v1614_v15 = vrot.slane %v1600_v11, %v1522_v46  ;;  %v1591_v16 = vrot.slane %v1583_v12, %v1522_v46  ;;  %v1607_v17 = vrot.slane %v1599_v13, %v1522_v46 }
 0x5b3   : >> { %v1617_v18 = vcombine.low %v1598_v14, %v1614_v15  ;;  %v1616_v19 = vcombine.high %v1591_v16, %v1607_v17  ;;  %v1615_v20 = vcombine.low %v1591_v16, %v1607_v17  ;;  %v1618_v21 = vcombine.high %v1598_v14, %v1614_v15 }
 0x5b5   : >> { %1624 = vrot.lane.b32.xlu0 %v1617_v18, %s2405_s25  ;;  %1620 = vrot.lane.b32.xlu1 %v1616_v19, %s2406_s26  ;;  %s1717_s25 = scalar_lea.vmem %s2759_s4, %s2394_s29 }
 0x5b6   : >> { %v2066_v60 = vld [vmem:[%s1717_s25] ss:$0 sm:$0xff] }
 0x5b9   : >> { %1628 = vrot.lane.b32.xlu1 %v1618_v21, %s2407_s27  ;;  %s2655_s27 = scalar_lea.vmem %s2761_s6, %s2068_s24  ;;  %v2069_v21 = vld [vmem:[%s1916_s14] ss:$0 sm:$0xff] }
 0x5ba   : >> { %v1843_v40 = vld [vmem:[%s2655_s27 + $0x78] sm:$0xff]  ;;  %v1842_v41 = vld [vmem:[%s2655_s27 + $0x70] sm:$0xff]  ;;  %v1841_v42 = vld [vmem:[%s2655_s27 + $0x68] sm:$0xff] }
 0x5bb   : >> { %2197 = vmatpush3.msra.mxu1 %v1843_v40  ;;  %v1840_v43 = vld [vmem:[%s2655_s27 + $0x60] sm:$0xff]  ;;  %v1839_v44 = vld [vmem:[%s2655_s27 + $0x58] sm:$0xff]  ;;  %v1838_v45 = vld [vmem:[%s2655_s27 + $0x50] sm:$0xff] }
 0x5bc   : >> { %2198 = vmatprep.subr.mxu1 %v2396_v4  ;;  %v1837_v46 = vld [vmem:[%s2655_s27 + $0x48] sm:$0xff]  ;;  %v1836_v47 = vld [vmem:[%s2655_s27 + $0x40] sm:$0xff]  ;;  %v1835_v48 = vld [vmem:[%s2655_s27 + $0x38] sm:$0xff] }
 0x5bd   : >> { %2199 = vmatpush3.msra.mxu1 %v1842_v41  ;;  %v1834_v49 = vld [vmem:[%s2655_s27 + $0x30] sm:$0xff]  ;;  %v1833_v50 = vld [vmem:[%s2655_s27 + $0x28] sm:$0xff]  ;;  %v1832_v51 = vld [vmem:[%s2655_s27 + $0x20] sm:$0xff] }
 0x5be   : >> { %2200 = vmatprep.subr.mxu1 %v2396_v4  ;;  %v1831_v52 = vld [vmem:[%s2655_s27 + $0x18] sm:$0xff]  ;;  %v1830_v53 = vld [vmem:[%s2655_s27 + $0x10] sm:$0xff]  ;;  %v1829_v63 = vld [vmem:[%s2655_s27 + $0x8] sm:$0xff] }
 0x5bf   : >> { %2201 = vmatpush3.msra.mxu1 %v1841_v42  ;;  %v1828_v0 = vld [vmem:[%s2655_s27] sm:$0xff] }
 0x5c0   : >> { %2202 = vmatprep.subr.mxu1 %v2396_v4 }
 0x5c1   : >> { %2203 = vmatpush3.msra.mxu1 %v1840_v43 }
 0x5c2   : >> { %2204 = vmatprep.subr.mxu1 %v2396_v4 }
 0x5c3   : >> { %2205 = vmatpush3.msra.mxu1 %v1839_v44 }
 0x5c4   : >> { %2206 = vmatprep.subr.mxu1 %v2396_v4 }
 0x5c5   : >> { %2207 = vmatpush3.msra.mxu1 %v1838_v45 }
 0x5c6   : >> { %2208 = vmatprep.subr.mxu1 %v2396_v4 }
 0x5c7   : >> { %2209 = vmatpush3.msra.mxu1 %v1837_v46 }
 0x5c8   : >> { %2210 = vmatprep.subr.mxu1 %v2396_v4 }
 0x5c9   : >> { %2211 = vmatpush3.msra.mxu1 %v1836_v47 }
 0x5ca   : >> { %2212 = vmatprep.subr.mxu1 %v2396_v4 }
 0x5cb   : >> { %2213 = vmatpush3.msra.mxu1 %v1835_v48 }
 0x5cc   : >> { %2214 = vmatprep.subr.mxu1 %v2396_v4 }
 0x5cd   : >> { %2215 = vmatpush3.msra.mxu1 %v1834_v49 }
 0x5ce   : >> { %2216 = vmatprep.subr.mxu1 %v2396_v4 }
 0x5cf   : >> { %2217 = vmatpush3.msra.mxu1 %v1833_v50 }
 0x5d0   : >> { %2218 = vmatprep.subr.mxu1 %v2396_v4 }
 0x5d1   : >> { %2219 = vmatpush3.msra.mxu1 %v1832_v51 }
 0x5d2   : >> { %2220 = vmatprep.subr.mxu1 %v2396_v4 }
 0x5d3   : >> { %2221 = vmatpush3.msra.mxu1 %v1831_v52 }
 0x5d4   : >> { %2222 = vmatprep.subr.mxu1 %v2396_v4 }
 0x5d5   : >> { %2223 = vmatpush3.msra.mxu1 %v1830_v53 }
 0x5d6   : >> { %2224 = vmatprep.subr.mxu1 %v2396_v4 }
 0x5d7   : >> { %2225 = vmatpush3.msra.mxu1 %v1829_v63 }
 0x5d8   : >> { %2226 = vmatprep.subr.mxu1 %v2396_v4 }
 0x5d9   : >> { %2227 = vmatpush3.msra.mxu1 %v1828_v0 }
 0x627   : >> { %v1621_v22 = vpop.permute.xlu1 %1620  ;;  %v1625_v23 = vpop.permute.xlu0 %1624 }
 0x628   : >> { %v1631_v24 = vsel %vm568_vm3, %v1615_v20, %v1621_v22 }
 0x629   : >> { %v1633_v26 = vsel %vm1632_vm4, %v1631_v24, %v1625_v23 }
 0x62b   : >> { %v1629_v25 = vpop.permute.xlu1 %1628 }
 0x62c   : >> { %v1635_v27 = vsel %vm1634_vm5, %v1633_v26, %v1629_v25 }
 0x62d   : >> { %2183 = vmatmul.mubr.msk.f32.vlgmr.msra.gmra.mxu0 %vm347_vm2, %v1635_v27 }
 0x62e   : >> { %2193 = vmatprep.mubr.msk.f32.mxu0 %vm2397_vm1, %v2396_v4  ;;  %2186 = vmatpush3.msra.mxu0 %v1751_v37 }
 0x62f   : >> { %2187 = vmatprep.subr.mxu0 %v2396_v4 }
 0x6ed   : >> { %v1710_v28 = vpop.f32.mrf.mxu0 }
 0x6ee   : >> { %v1714_v29 = vadd.f32 %v2390_v3, %v1710_v28  ;;  %v1750_v3 = vld [vmem:[%s1747_s23 + $0x10] sm:$0xff]  ;;  %s1918_s23 = scalar_lea.vmem %s2763_s8, %s2394_s29  ;;  %s339_s29 = sadd.s32 1, %s2394_s29  }
 0x6ef   : >> { %v2184_v30 = vpop.f32.mrf.mxu0  ;;  %2188 = vmatpush3.msra.mxu0 %v1750_v3  ;;  %v2070_v23 = vld [vmem:[%s1918_s23] ss:$0 sm:$0xff]  ;;  %p336_p11 = scmp.ge.s32.totalorder %s339_s29, 7  }
 0x6f0   : >> { %v1719_v31 = vsel %vm347_vm2, %v1714_v29, 0.0  ;;  %2189 = vmatprep.subr.mxu0 %v2396_v4  ;;  %s2072_s24 = sshll.u32 (%p336_p11), %s2480_s13, 7  ;;  %s1963_s14 = sshll.u32 (%p336_p11), %s323_s28, 4  ;;  %s1964_s14 = int_to_ptr.vmem [resolvable:$true] %s1963_s14 }
 0x6f1   : >> { %1720 = vadd.xlane.f32.xlu1 %v1719_v31  ;;  %2190 = vmatpush3.msra.mxu0 %v1749_v38  ;;  %s1961_s27 = scalar_lea.hbm (%p336_p11), %s2764_s9, %s2072_s24  ;;  %s1950_s16 = scalar_lea.sflag (%p336_p11), [#allocation3], %s321_s21 }
 0x6f2   : >> { %2191 = vmatprep.subr.mxu0 %v2396_v4  ;;  %s2318_s29 = scalar_lea.vmem (%p336_p11), %s1964_s14, 128  ;;  %s2408_s17 = smov (%p336_p11), [#allocation2]  }
 0x6f3   : >> { %2192 = vmatpush3.msra.mxu0 %v1748_v39  ;;  %p2319_p12 = scmp.ne.s32.totalorder (%p336_p11), %s1964_s14, %s2318_s29  ;;  %s2322_s23 = sshll.u32 (%p336_p11), %s2408_s17, 4  ;;  %s2323_s23 = int_to_ptr.vmem [resolvable:$false] %s2322_s23 }
 0x6f4   : > { %s2324_s0 = scalar_lea.vmem (%p336_p11), %s2323_s23, 256  ;;  %p2325_p1 = scmp.lt.s32.totalorder (%p336_p11), %s1964_s14, %s2323_s23 }
 0x6f5   : > { %p2320_p13 = pnand (%p336_p11), %p2319_p12, %p2497_p5  ;;  %p2326_p2 = scmp.lt.s32.totalorder (%p336_p11), %s2324_s0, %s2318_s29 }
 0x6f7   : > { %p2321_p0 = pneg (%p336_p11), %p2320_p13  ;;  %p2327_p3 = por (%p336_p11), %p2326_p2, %p2325_p1 }
 0x6f9   : > { %p2328_p4 = pnand (%p336_p11), %p2327_p3, %p2321_p0 }
 0x77a   : >> { %v1721_v32 = vpop.xlane.xlu1 %1720 }
 0x77b   : >> { %v1723_v33 = vmul.f32 0.03125, %v1721_v32 }
 0x77d   : >> { %v2641_v34 = vsub.f32 %v1714_v29, %v1723_v33 }
 0x77f   : >> { %v1725_v35 = vmul.f32 %v2641_v34, %v2641_v34 }
 0x781   : >> { %v1726_v36 = vsel %vm347_vm2, %v1725_v35, 0.0 }
 0x782   : >> { %1727 = vadd.xlane.f32.xlu0 %v1726_v36 }
 0x80b   : >> { %v1728_v54 = vpop.xlane.xlu0 %1727 }
 0x80c   : >> { %v1729_v55 = vmul.f32 0.03125, %v1728_v54 }
 0x80e   : >> { %v1730_v56 = vadd.f32 1e-05, %v1729_v55 }
 0x810   : >> { %2314 = vrsqrt.f32 %v1730_v56 }
 0x81d   : >> { %v2315_v57 = vpop.eup %2314 }
 0x81e   : >> { %v1732_v59 = vmul.f32 %v2315_v57, %v2641_v34 }
 0x820   : >> { %v1739_v61 = vmul.f32 %v2065_v58, %v1732_v59 }
 0x822   : >> { %v1746_v62 = vadd.f32 %v2066_v60, %v1739_v61 }
 0x824   : >> { %2194 = vmatmul.mubr.msk.f32.vlgmr.msra.gmra.mxu0 %vm347_vm2, %v1746_v62 }
 0x8e4   : >> { %v1821_v5 = vpop.f32.mrf.mxu0 }
 0x8e5   : >> { %v1825_v6 = vmax.f32 %v1821_v5, 0.0 }
 0x8e6   : >> { %v2195_v7 = vpop.f32.mrf.mxu0 }
 0x8e7   : >> { %2229 = vmatmul.mubr.f32.vlgmr.msra.gmra.mxu1 %v1825_v6 }
 0x9a7   : >> { %v1910_v8 = vpop.f32.mrf.mxu1 }
 0x9a8   : >> { %v1914_v9 = vmax.f32 %v1910_v8, 0.0 }
 0x9a9   : >> { %v2230_v10 = vpop.f32.mrf.mxu1 }
 0x9aa   : >> { %v1915_v11 = vadd.f32 %v1914_v9, %v1746_v62 }
 0x9ac   : >> { %v1920_v12 = vsel %vm347_vm2, %v1915_v11, 0.0 }
 0x9ad   : >> { %1921 = vadd.xlane.f32.xlu1 %v1920_v12 }
 0xa36   : >> { %v1922_v13 = vpop.xlane.xlu1 %1921 }
 0xa37   : >> { %v1923_v14 = vmul.f32 0.03125, %v1922_v13 }
 0xa39   : >> { %v1924_v15 = vsub.f32 %v1915_v11, %v1923_v14 }
 0xa3b   : >> { %v1925_v16 = vmul.f32 %v1924_v15, %v1924_v15 }
 0xa3d   : >> { %v1926_v4 = vsel %vm347_vm2, %v1925_v16, 0.0 }
 0xa3e   : >> { %1927 = vadd.xlane.f32.xlu0 %v1926_v4 }
 0xac7   : >> { %v1928_v17 = vpop.xlane.xlu0 %1927 }
 0xac8   : >> { %v1929_v18 = vmul.f32 0.03125, %v1928_v17 }
 0xaca   : >> { %v1930_v19 = vadd.f32 1e-05, %v1929_v18 }
 0xacc   : >> { %2316 = vrsqrt.f32 %v1930_v19 }
 0xad9   : >> { %v2317_v20 = vpop.eup %2316 }
 0xada   : >> { %v1932_v22 = vmul.f32 %v2317_v20, %v1924_v15 }
 0xadc   : >> { %v1939_v24 = vmul.f32 %v2069_v21, %v1932_v22  ;;  %338 = sbr.rel (!%p336_p11) target bundleno = 26 (0x1a), region = 106 }
 0xade   : >> { %v1946_v25 = vadd.f32 %v2070_v23, %v1939_v24  }
 0xae0   : >> { %v2769_v3 = vmov %v1946_v25  ;;  %1948 = vst.msk [vmem:[%s323_s28] sm:$0xff] (%p336_p11), %vm347_vm2, %v1946_v25 }
 0xae1   : > { %2331 = shalt.err (!%p2328_p4)
}
 0xae2   : > { %s2332_s13 = scalar_lea.hbm %s1961_s27, 128  ;;  %s2336_s28 = scalar_lea.hbm %s2764_s9, 256 }
 0xae3   : > { %p2333_p7 = scmp.ne.s32.totalorder %s1961_s27, %s2332_s13  ;;  %p2337_p10 = scmp.lt.s32.totalorder %s1961_s27, %s2764_s9 }
 0xae4   : > { %p2338_p11 = scmp.lt.s32.totalorder %s2336_s28, %s2332_s13 }
 0xae5   : > { %p2334_p8 = pnand %p2333_p7, %p2497_p5 }
 0xae6   : > { %p2339_p12 = por %p2338_p11, %p2337_p10 }
 0xae7   : > { %p2335_p9 = pneg %p2334_p8 }
 0xae9   : > { %p2340_p13 = pnand %p2339_p12, %p2335_p9 }
 0xaeb   : > { %2343 = shalt.err (!%p2340_p13)
}
 0xaec   : > { %2231 = dma.vmem_to_hbm [thread:$0]  (%p2497_p5), %s1964_s14, 128, %s1961_s27, %s1950_s16  }
 0xaed PF: > { %p2237_p0 = scmp.ge.s32.totalorder %s2386_s12, 2  ;;  %s1975_s0 = sand.u32 1, %s2374_s30  }
 0xaee   : > { %s1976_s26 = scalar_lea.sflag [#allocation3], %s1975_s0 }
 0xaef   : > { %p2234_p1 = pnand %p2237_p0, %p2501_p6 }
 0xaf1   : > { %p2235_p2 = pneg %p2234_p1 }
 0xaf3   : > { %2369 = dma.done.wait (%p2235_p2), %s1976_s26, 128  }
 0xaf4   : > { %2371 = vsyncadd (%p2235_p2), %s1976_s26, 4294967168  ;;  %p19_p3 = scmp.ge.s32.totalorder %s2484_s15, 4   ;;  %s2770_s30 = smov %s2378_s10 }
 0xaf5   : > { %s2771_s10 = smov %s2382_s11  ;;  %s2772_s11 = smov %s2495_s18 }
 0xaf6   : > { %s2773_s12 = smov %s2484_s15  ;;  %21 = sbr.rel (!%p19_p3) target bundleno = 5 (0x5), region = 117 }
 0xafb   :  { %1981 = vsyncpa [#allocation3], 1 }
 0xafc   :  { %1983 = vsyncpa [#allocation3 + $0x1], 1 }

</bundles_post_ra>
